<compile_context>
chip_gen: v5e
topology: v5e:2x2
jax: 0.10.0
libtpu: 0.0.40
codegen_flags: <defaults>
</compile_context>

<pallas_src>
import functools
import jax
import jax.numpy as jnp
from jax.experimental import pallas as pl
from jax.experimental.pallas import tpu as pltpu


def _cdiv(a, b):
    return (a + b - 1) // b


# -----------------------------------------------------------------------------
# Kernel 1: masked token cross-entropy (sum reduction, ignore_index=pad_id)
# grid = (row tiles [parallel], vocab tiles [arbitrary]); online softmax in
# VMEM scratch; one partial sum per row tile in an (8,128) lane-dense slab.
# -----------------------------------------------------------------------------
def _recon_kernel(logits_ref, tgt_ref, out_ref, m_ref, l_ref, s_ref,
                  *, pad_id, n_rows, vocab, blk_r, blk_v,
                  needs_row_mask, needs_col_mask):
    i = pl.program_id(0)
    j = pl.program_id(1)

    @pl.when(j == 0)
    def _():
        m_ref[...] = jnp.full(m_ref.shape, -1e30, jnp.float32)
        l_ref[...] = jnp.zeros(l_ref.shape, jnp.float32)
        s_ref[...] = jnp.zeros(s_ref.shape, jnp.float32)

    x = logits_ref[...].astype(jnp.float32)                     # [blk_r, blk_v]
    t = tgt_ref[...]                                            # [blk_r, 1] i32

    # One tile-local column iota, reused for the (optional) validity mask and
    # the target one-hot; the target is compared in tile-local coordinates so
    # no full-tile +j*blk_v add is needed.
    col_l = jax.lax.broadcasted_iota(jnp.int32, (blk_r, blk_v), 1)
    t_l = t - j * blk_v                                         # [blk_r, 1]
    if needs_col_mask:
        x = jnp.where(col_l < (vocab - j * blk_v), x, -1e30)    # finite pad

    m_prev = m_ref[...]
    m_new = jnp.maximum(m_prev, jnp.max(x, axis=-1, keepdims=True))
    alpha = jnp.exp(m_prev - m_new)
    l_ref[...] = alpha * l_ref[...] + jnp.sum(jnp.exp(x - m_new), axis=-1,
                                              keepdims=True)
    # each target column lives in exactly one vocab tile -> plain accumulation
    s_ref[...] = s_ref[...] + jnp.sum(jnp.where(col_l == t_l, x, 0.0),
                                      axis=-1, keepdims=True)
    m_ref[...] = m_new

    @pl.when(j == pl.num_programs(1) - 1)
    def _():
        nll = m_ref[...] + jnp.log(l_ref[...]) - s_ref[...]     # [blk_r, 1]
        keep = t != pad_id
        if needs_row_mask:
            row = jax.lax.broadcasted_iota(jnp.int32, (blk_r, 1), 0) + i * blk_r
            keep = jnp.logical_and(keep, row < n_rows)
        part = jnp.sum(jnp.where(keep, nll, 0.0))
        r8 = jax.lax.broadcasted_iota(jnp.int32, (8, 128), 0)
        c8 = jax.lax.broadcasted_iota(jnp.int32, (8, 128), 1)
        out_ref[...] = jnp.where((r8 == 0) & (c8 == 0), part, 0.0)


def _run_recon(logits2d, tgt2d, pad_id):
    n_rows, vocab = logits2d.shape
    itemsize = logits2d.dtype.itemsize

    # Row tile: multiple of 8 (or the full extent); prefer >= 2 row tiles so
    # the "parallel" row axis can be split across v7x's 2 TensorCores.
    if n_rows > 512:
        blk_r = 512
    elif n_rows >= 16 and n_rows % 16 == 0:
        blk_r = n_rows // 2
    elif n_rows >= 16:
        blk_r = ((n_rows // 2 + 7) // 8) * 8
    else:
        blk_r = n_rows

    # Vocab tile: target ~8 MiB per buffer (16 MiB double-buffered) — 4096
    # cols for fp32 / 8192 for bf16 at blk_r=512; capped at the padded vocab.
    v128 = _cdiv(vocab, 128) * 128
    blk_v = max(128, min(v128,
                         ((8 * 1024 * 1024) // (blk_r * itemsize)) // 128 * 128))

    # If one vocab tile already covers the whole (padded) vocab, grow the row
    # tile instead to amortize per-step overhead (still <= ~8 MiB/buffer).
    if blk_v >= v128 and n_rows > 512:
        max_r = ((8 * 1024 * 1024) // (blk_v * itemsize)) // 8 * 8
        half_rows = max(8, ((_cdiv(n_rows, 2)) + 7) // 8 * 8)
        blk_r = max(blk_r, min(max_r, half_rows, 4096))

    gr = _cdiv(n_rows, blk_r)
    gv = _cdiv(vocab, blk_v)
    needs_row_mask = (gr * blk_r) != n_rows
    needs_col_mask = (gv * blk_v) != vocab

    cost = pl.CostEstimate(
        flops=int(8 * n_rows * gv * blk_v),
        transcendentals=int(n_rows * gv * blk_v),
        bytes_accessed=int(n_rows * gv * blk_v * itemsize + n_rows * 4
                           + gr * 8 * 128 * 4))
    # Note: a deeper pipeline (pipeline_mode=pl.Buffered(3) on the logits
    # spec) can help v5e's slower HBM; default double-buffering keeps the
    # VMEM footprint safe on v7x (64 MiB physical).
    out = pl.pallas_call(
        functools.partial(_recon_kernel, pad_id=pad_id, n_rows=n_rows,
                          vocab=vocab, blk_r=blk_r, blk_v=blk_v,
                          needs_row_mask=needs_row_mask,
                          needs_col_mask=needs_col_mask),
        out_shape=jax.ShapeDtypeStruct((gr * 8, 128), jnp.float32),
        grid=(gr, gv),
        in_specs=[pl.BlockSpec((blk_r, blk_v), lambda i, j: (i, j)),
                  pl.BlockSpec((blk_r, 1), lambda i, j: (i, 0))],
        out_specs=pl.BlockSpec((8, 128), lambda i, j: (i, 0)),
        scratch_shapes=[pltpu.VMEM((blk_r, 1), jnp.float32)] * 3,
        compiler_params=pltpu.CompilerParams(
            dimension_semantics=("parallel", "arbitrary"),
            vmem_limit_bytes=48 * 1024 * 1024),
        cost_estimate=cost,
    )(logits2d, tgt2d)
    return jnp.sum(out)


# -----------------------------------------------------------------------------
# Kernel 2: exact KL(q||p) with free-bits clamp + sigma penalties, and
# (optionally fused) per-batch partial sums of the reparameterized sample z.
# Inputs viewed as (B, L*D) in native dtype (last dim == full dim, lane-legal).
# Outputs: (8,128) slab of [sum(kld), sum((kld-fb)^2), sum(sig_q), sum(sig_p)]
# per batch tile, plus (blk_b, 128) z column-sums per tile when fused.
# -----------------------------------------------------------------------------
def _kld_kernel(*refs, free_bits, B, blk_b, lane_chunks, fuse_z, needs_mask):
    if fuse_z:
        mu_q_ref, lv_q_ref, mu_p_ref, lv_p_ref, eps_ref, scal_ref, zsum_ref = refs
    else:
        mu_q_ref, lv_q_ref, mu_p_ref, lv_p_ref, scal_ref = refs
    i = pl.program_id(0)
    f32 = jnp.float32
    mu_q = mu_q_ref[...].astype(f32)                 # [blk_b, L*D]
    lv_q = lv_q_ref[...].astype(f32)
    mu_p = mu_p_ref[...].astype(f32)
    lv_p = lv_p_ref[...].astype(f32)

    sig_q = jnp.exp(0.5 * lv_q)                      # E[sigma_q] penalty
    sig_p = jnp.exp(0.5 * lv_p)                      # E[sigma_p] penalty
    dmu = mu_q - mu_p
    # exact KL(q||p) = 0.5*(var_ratio + dmu^2/var_p - 1 - log var_ratio)
    # (no approximate reciprocal in the loss term)
    kld = 0.5 * ((lv_p - lv_q) + jnp.exp(lv_q - lv_p)
                 + dmu * dmu * jnp.exp(-lv_p) - 1.0)
    if free_bits > 0.0:
        kld = jnp.maximum(kld, free_bits)
    d = kld - free_bits                              # shifted for stable variance

    if fuse_z:
        # torch reference: z = mu + eps*exp(0.5*log(q.scale)) = mu + eps*exp(0.25*lv_q)
        z = mu_q + eps_ref[...].astype(f32) * jnp.sqrt(sig_q)

    if needs_mask:
        row = jax.lax.broadcasted_iota(jnp.int32, (blk_b, 1), 0) + i * blk_b
        valid = row < B
        kld = jnp.where(valid, kld, 0.0)
        d = jnp.where(valid, d, 0.0)
        sig_q = jnp.where(valid, sig_q, 0.0)
        sig_p = jnp.where(valid, sig_p, 0.0)

    s0 = jnp.sum(kld)
    s1 = jnp.sum(d * d)
    s2 = jnp.sum(sig_q)
    s3 = jnp.sum(sig_p)
    r8 = jax.lax.broadcasted_iota(jnp.int32, (8, 128), 0)
    c8 = jax.lax.broadcasted_iota(jnp.int32, (8, 128), 1)
    vals = jnp.where(c8 == 0, s0,
           jnp.where(c8 == 1, s1,
           jnp.where(c8 == 2, s2,
           jnp.where(c8 == 3, s3, 0.0))))
    scal_ref[...] = jnp.where(r8 == 0, vals, 0.0)

    if fuse_z:
        # Sum over lane-aligned 128-wide chunks (static, free slices).  Each
        # chunk contains 128/D full latent vectors, so lane c holds dim c % D;
        # the wrapper folds the 128 lanes into D and divides by L.
        zacc = z[:, 0:128]
        for k in range(1, lane_chunks):
            zacc = zacc + z[:, k * 128:(k + 1) * 128]
        zsum_ref[...] = zacc


def _run_kld(mu_q2, lv_q2, mu_p2, lv_p2, eps2, free_bits, fuse_z):
    B, LD = mu_q2.shape
    itemsize = mu_q2.dtype.itemsize
    eps_bytes = eps2.dtype.itemsize if fuse_z else 0
    per_row = LD * (4 * itemsize + eps_bytes)        # all input streams, 1 row

    if B <= 8:
        blk_b = B                                    # full dim (lane-legal)
    else:
        budget = max(8, ((12 * 1024 * 1024) // per_row) // 8 * 8)
        half = max(8, (B // 2) // 8 * 8)             # >=2 tiles (v7x megacore)
        blk_b = max(8, min(budget, half, (B // 8) * 8, 1024))
    gb = _cdiv(B, blk_b)
    needs_mask = (gb * blk_b) != B
    lane_chunks = (LD // 128) if fuse_z else 0

    in_arrays = [mu_q2, lv_q2, mu_p2, lv_p2] + ([eps2] if fuse_z else [])
    in_specs = [pl.BlockSpec((blk_b, LD), lambda i: (i, 0)) for _ in in_arrays]
    if fuse_z:
        out_shape = (jax.ShapeDtypeStruct((gb * 8, 128), jnp.float32),
                     jax.ShapeDtypeStruct((gb * blk_b, 128), jnp.float32))
        out_specs = (pl.BlockSpec((8, 128), lambda i: (i, 0)),
                     pl.BlockSpec((blk_b, 128), lambda i: (i, 0)))
    else:
        out_shape = jax.ShapeDtypeStruct((gb * 8, 128), jnp.float32)
        out_specs = pl.BlockSpec((8, 128), lambda i: (i, 0))

    cost = pl.CostEstimate(
        flops=int(20 * B * LD),
        transcendentals=int((5 if fuse_z else 4) * B * LD),
        bytes_accessed=int(B * per_row + gb * 8 * 128 * 4
                           + (gb * blk_b * 128 * 4 if fuse_z else 0)))
    res = pl.pallas_call(
        functools.partial(_kld_kernel, free_bits=free_bits, B=B, blk_b=blk_b,
                          lane_chunks=lane_chunks, fuse_z=fuse_z,
                          needs_mask=needs_mask),
        out_shape=out_shape,
        grid=(gb,),
        in_specs=in_specs,
        out_specs=out_specs,
        compiler_params=pltpu.CompilerParams(
            dimension_semantics=("parallel",),
            vmem_limit_bytes=48 * 1024 * 1024),
        cost_estimate=cost,
    )(*in_arrays)
    if fuse_z:
        scal, zsum = res
    else:
        scal, zsum = res, None
    sums = jnp.sum(scal, axis=0)
    return sums[0], sums[1], sums[2], sums[3], zsum


# -----------------------------------------------------------------------------
# Kernel 3: InfoNCE (normalize + BxB matmul + diag CE) and two prop MSEs.
#   emits [info_nce, mse(prop_pred_mu, prop), mse(prop_pred_z, prop)]
# -----------------------------------------------------------------------------
def _small_kernel(zbar_ref, cond_ref, pmu_ref, pz_ref, prop_ref, out_ref,
                  *, temperature):
    z = zbar_ref[...].astype(jnp.float32)             # [B, D]
    c = cond_ref[...].astype(jnp.float32)             # [B, D]
    zn = z * jax.lax.rsqrt(jnp.maximum(jnp.sum(z * z, -1, keepdims=True), 1e-24))
    cn = c * jax.lax.rsqrt(jnp.maximum(jnp.sum(c * c, -1, keepdims=True), 1e-24))
    logits = jax.lax.dot_general(
        zn, cn, (((1,), (1,)), ((), ())),
        preferred_element_type=jnp.float32) / temperature        # [B, B]
    b = logits.shape[0]
    m = jnp.max(logits, axis=-1, keepdims=True)
    lse = m + jnp.log(jnp.sum(jnp.exp(logits - m), axis=-1, keepdims=True))
    row = jax.lax.broadcasted_iota(jnp.int32, (b, b), 0)
    col = jax.lax.broadcasted_iota(jnp.int32, (b, b), 1)
    diag = jnp.sum(jnp.where(row == col, logits, 0.0), axis=-1, keepdims=True)
    out_ref[0] = jnp.mean(lse - diag)                 # CE with labels=arange(B)

    dmu = pmu_ref[...] - prop_ref[...]
    dz = pz_ref[...] - prop_ref[...]
    out_ref[1] = jnp.mean(dmu * dmu)
    out_ref[2] = jnp.mean(dz * dz)


def _run_small(zbar, cond, pmu, pz, prop, temperature):
    # TODO(synk): for very large B (>~2K) the BxB logits block should be tiled
    # over query rows with an online LSE instead of one VMEM-resident block.
    return pl.pallas_call(
        functools.partial(_small_kernel, temperature=temperature),
        out_shape=jax.ShapeDtypeStruct((3,), jnp.float32),
        in_specs=[pl.BlockSpec(memory_space=pltpu.MemorySpace.VMEM)] * 5,
        out_specs=pl.BlockSpec(memory_space=pltpu.MemorySpace.SMEM),
        compiler_params=pltpu.CompilerParams(vmem_limit_bytes=32 * 1024 * 1024),
    )(zbar, cond, pmu, pz, prop)


# -----------------------------------------------------------------------------
# Module-equivalent wrapper
# -----------------------------------------------------------------------------
class ConditionalVAELossPallas:
    def __init__(self, vocab_size, pad_id, max_beta=1.0, cyc_steps=400,
                 num_cycles=4, anneal_steps=1000, free_bits=0.02,
                 capacity_max=0.0, capacity_inc=0.002, gamma=5.0,
                 prop_w=1.0, nce=0.02, sig_pen_q=0.003, sig_pen_p=0.003,
                 imb=0.05, latent_dim=64, key=None):
        self.latent_dim = latent_dim
        self.V = vocab_size
        self.pad_id = pad_id
        self.fb = free_bits
        self.max_beta = max_beta
        self.cyc_steps = cyc_steps
        self.num_cycles = num_cycles
        self.prop_w = prop_w
        self.nce = nce
        self.sig_pen_q = sig_pen_q
        self.sig_pen_p = sig_pen_p
        self.imb = imb
        # Deterministic init of the nn.Linear(3, latent_dim) projection.
        if key is None:
            key = jax.random.PRNGKey(42)
        kw, kb = jax.random.split(key)
        bound = 1.0 / jnp.sqrt(3.0)
        self.proj_w = jax.random.uniform(kw, (latent_dim, 3), jnp.float32,
                                         -bound, bound)
        self.proj_b = jax.random.uniform(kb, (latent_dim,), jnp.float32,
                                         -bound, bound)

    def cyclical_beta(self, step):
        # Triangular cyclical beta schedule (pure python, step is static).
        cycle_idx = step // self.cyc_steps
        if cycle_idx >= self.num_cycles:
            return self.max_beta
        pos = (step % self.cyc_steps) / self.cyc_steps
        return self.max_beta * pos

    def __call__(self, logits, target_tokens, mu_q, lv_q, mu_p, lv_p,
                 prop_pred_mu, true_prop, prop_pred_z, step, eps_key):
        B, L, V = logits.shape
        D = self.latent_dim
        N = B * L
        LD = L * D

        # ---- reconstruction CE (Pallas, native dtype; bf16 logits are fine --
        # the kernel casts to f32 in-VMEM and keeps f32 accumulators) ---------
        logits2d = logits.reshape(N, V)
        tgt2d = target_tokens.reshape(N, 1).astype(jnp.int32)
        recon = _run_recon(logits2d, tgt2d, self.pad_id) / B

        # ---- KL, free bits, imbalance, sigma penalties (+ fused zbar) --------
        eps = jax.random.normal(eps_key, (B, L, D), jnp.float32)
        fuse_z = (LD % 128 == 0) and (1 <= D <= 128) and (128 % D == 0)
        mu_q2 = mu_q.reshape(B, LD)
        lv_q2 = lv_q.reshape(B, LD)
        mu_p2 = mu_p.reshape(B, LD)
        lv_p2 = lv_p.reshape(B, LD)
        eps2 = eps.reshape(B, LD) if fuse_z else None
        s_kld, s_dsq, s_sq, s_sp, zsum = _run_kld(
            mu_q2, lv_q2, mu_p2, lv_p2, eps2, self.fb, fuse_z)

        n_el = N * D
        raw_kld_seq = s_kld / B
        kld_per_token = s_kld / N
        mean_kld = s_kld / n_el
        mean_d = mean_kld - self.fb
        imb = s_dsq / n_el - mean_d * mean_d            # population variance
        sig_pen_q = s_sq / n_el
        sig_pen_p = s_sp / n_el

        beta = self.cyclical_beta(step)
        kl_term = beta * kld_per_token

        # ---- zbar (mean over L of the reparameterized sample) ----------------
        if fuse_z:
            # fold the 128-lane per-batch column sums back to D dims, mean over L
            zbar = zsum[:B].reshape(B, 128 // D, D).sum(axis=1) / L
        else:
            # TODO(synk): unfused fallback re-reads mu_q/lv_q from HBM for zbar
            zbar = jnp.mean(mu_q.astype(jnp.float32)
                            + eps * jnp.exp(0.25 * lv_q.astype(jnp.float32)),
                            axis=1)

        # ---- glue: condition projection --------------------------------------
        prop3 = true_prop.reshape(B, 3).astype(jnp.float32)
        cond = jax.nn.relu(prop3 @ self.proj_w.T + self.proj_b)      # [B, D]

        # ---- InfoNCE + prop MSEs (Pallas) ------------------------------------
        small = _run_small(zbar, cond,
                           prop_pred_mu.reshape(B, 3).astype(jnp.float32),
                           prop_pred_z.reshape(B, 3).astype(jnp.float32),
                           prop3, temperature=0.2)
        info_nce, prop_loss_mu, prop_loss_z = small[0], small[1], small[2]

        loss = (recon + kl_term
                + self.prop_w * (prop_loss_mu + 0.5 * prop_loss_z)
                + self.nce * info_nce
                + self.sig_pen_q * sig_pen_q
                + self.sig_pen_p * sig_pen_p
                + self.imb * imb)
        return (loss, recon, kl_term, raw_kld_seq, kld_per_token, prop_loss_mu)


# TODO(synk): cyclical_beta stays a static python scalar and eps
# (torch.randn_like) comes from jax.random in the wrapper; the nn.Linear(3, D)
# projection weights are re-initialized in JAX (same distribution as torch).

if __name__ == "__main__":
    key = jax.random.PRNGKey(0)
    B, L, D = 2, 8, 64
    V = 32
    PAD_ID = V - 1

    ks = jax.random.split(key, 10)
    logits = jax.random.normal(ks[0], (B, L, V), jnp.float32)
    target = jax.random.randint(ks[1], (B, L), 0, V - 1, dtype=jnp.int32)
    target = target.at[:, -2:].set(PAD_ID)                    # some PAD tokens
    mu_q = 0.5 * jax.random.normal(ks[2], (B, L, D), jnp.float32)
    lv_q = 0.1 * jax.random.normal(ks[3], (B, L, D), jnp.float32)
    mu_p = 0.5 * jax.random.normal(ks[4], (B, L, D), jnp.float32)
    lv_p = 0.1 * jax.random.normal(ks[5], (B, L, D), jnp.float32)
    true_prop = jax.random.normal(ks[6], (B, 3, 1), jnp.float32)
    prop_pred_mu = jax.random.normal(ks[7], (B, 3, 1), jnp.float32)
    prop_pred_z = jax.random.normal(ks[8], (B, 3, 1), jnp.float32)

    loss_mod = ConditionalVAELossPallas(vocab_size=V, pad_id=PAD_ID,
                                        latent_dim=D, key=ks[9])
    out = loss_mod(logits, target, mu_q, lv_q, mu_p, lv_p,
                   prop_pred_mu, true_prop, prop_pred_z,
                   step=100, eps_key=jax.random.PRNGKey(123))
    out = jax.block_until_ready(out)
    print("KERNEL_OK")
</pallas_src>

<mosaic_0001>
module attributes {stable_mosaic.version = 11 : i64} {
  func.func @_recon_kernel(%arg0: i32, %arg1: i32, %arg2: memref<8x128xf32, #tpu.memory_space<vmem>>, %arg3: memref<8x1xi32, #tpu.memory_space<vmem>>, %arg4: memref<8x128xf32, #tpu.memory_space<vmem>>, %arg5: memref<8x1xf32, #tpu.memory_space<vmem>>, %arg6: memref<8x1xf32, #tpu.memory_space<vmem>>, %arg7: memref<8x1xf32, #tpu.memory_space<vmem>>) attributes {dimension_semantics = [#tpu.dimension_semantics<parallel>, #tpu.dimension_semantics<arbitrary>], iteration_bounds = array<i64: 2, 1>, scalar_prefetch = 0 : i64, scratch_operands = 3 : i64, tpu.core_type = #tpu.core_type<tc>, window_params = [{transform_indices = @transform_0, window_bounds = array<i64: 8, 128>}, {transform_indices = @transform_1, window_bounds = array<i64: 8, 1>}, {transform_indices = @transform_2, window_bounds = array<i64: 8, 128>}]} {
    %c0_i32 = arith.constant 0 : i32
    %0 = arith.cmpi eq, %arg1, %c0_i32 : i32
    %1 = arith.extui %0 : i1 to i32
    %c0_i32_0 = arith.constant 0 : i32
    %2 = arith.cmpi ne, %1, %c0_i32_0 : i32
    scf.if %2 {
      %cst_23 = arith.constant -1.000000e+30 : f32
      %43 = vector.broadcast %cst_23 : f32 to vector<8x1xf32>
      %c0_24 = arith.constant 0 : index
      %c0_25 = arith.constant 0 : index
      %44 = vector.load %arg5[%c0_24, %c0_25] : memref<8x1xf32, #tpu.memory_space<vmem>>, vector<8x1xf32>
      tpu.vector_store %arg5[%c0_24, %c0_25], %43 {strides = array<i32>} : memref<8x1xf32, #tpu.memory_space<vmem>>, vector<8x1xf32>,
      %cst_26 = arith.constant 0.000000e+00 : f32
      %45 = vector.broadcast %cst_26 : f32 to vector<8x1xf32>
      %c0_27 = arith.constant 0 : index
      %c0_28 = arith.constant 0 : index
      %46 = vector.load %arg6[%c0_27, %c0_28] : memref<8x1xf32, #tpu.memory_space<vmem>>, vector<8x1xf32>
      tpu.vector_store %arg6[%c0_27, %c0_28], %45 {strides = array<i32>} : memref<8x1xf32, #tpu.memory_space<vmem>>, vector<8x1xf32>,
      %cst_29 = arith.constant 0.000000e+00 : f32
      %47 = vector.broadcast %cst_29 : f32 to vector<8x1xf32>
      %c0_30 = arith.constant 0 : index
      %c0_31 = arith.constant 0 : index
      %48 = vector.load %arg7[%c0_30, %c0_31] : memref<8x1xf32, #tpu.memory_space<vmem>>, vector<8x1xf32>
      tpu.vector_store %arg7[%c0_30, %c0_31], %47 {strides = array<i32>} : memref<8x1xf32, #tpu.memory_space<vmem>>, vector<8x1xf32>,
    } else {
    }
    %c0 = arith.constant 0 : index
    %c0_1 = arith.constant 0 : index
    %3 = vector.load %arg2[%c0, %c0_1] : memref<8x128xf32, #tpu.memory_space<vmem>>, vector<8x128xf32>
    %c0_2 = arith.constant 0 : index
    %c0_3 = arith.constant 0 : index
    %4 = vector.load %arg3[%c0_2, %c0_3] : memref<8x1xi32, #tpu.memory_space<vmem>>, vector<8x1xi32>
    %5 = tpu.iota {dimensions = array<i32: 1>} : vector<8x128xi32>
    %c128_i32 = arith.constant 128 : i32
    %6 = arith.muli %arg1, %c128_i32 : i32
    %7 = vector.broadcast %6 : i32 to vector<8x1xi32>
    %8 = arith.subi %4, %7 : vector<8x1xi32>
    %c128_i32_4 = arith.constant 128 : i32
    %9 = arith.muli %arg1, %c128_i32_4 : i32
    %c32_i32 = arith.constant 32 : i32
    %10 = arith.subi %c32_i32, %9 : i32
    %11 = vector.broadcast %10 : i32 to vector<8x128xi32>
    %12 = arith.cmpi slt, %5, %11 : vector<8x128xi32>
    %cst = arith.constant -1.000000e+30 : f32
    %13 = vector.broadcast %cst : f32 to vector<8x128xf32>
    %14 = arith.select %12, %3, %13 : vector<8x128xi1>, vector<8x128xf32>
    %c0_5 = arith.constant 0 : index
    %c0_6 = arith.constant 0 : index
    %15 = vector.load %arg5[%c0_5, %c0_6] : memref<8x1xf32, #tpu.memory_space<vmem>>, vector<8x1xf32>
    %cst_7 = arith.constant dense<0xFF800000> : vector<8xf32>
    %16 = vector.multi_reduction <maximumf>, %14, %cst_7 [1] : vector<8x128xf32> to vector<8xf32>
    %17 = vector.shape_cast %16 : vector<8xf32> to vector<8x1xf32>
    %18 = arith.maximumf %15, %17 : vector<8x1xf32>
    %19 = arith.subf %15, %18 : vector<8x1xf32>
    %20 = math.exp %19 : vector<8x1xf32>
    %c0_8 = arith.constant 0 : index
    %c0_9 = arith.constant 0 : index
    %21 = vector.load %arg6[%c0_8, %c0_9] : memref<8x1xf32, #tpu.memory_space<vmem>>, vector<8x1xf32>
    %22 = arith.mulf %20, %21 : vector<8x1xf32>
    %23 = vector.broadcast %18 : vector<8x1xf32> to vector<8x128xf32>
    %24 = arith.subf %14, %23 : vector<8x128xf32>
    %25 = math.exp %24 : vector<8x128xf32>
    %cst_10 = arith.constant dense<0.000000e+00> : vector<8xf32>
    %26 = vector.multi_reduction <add>, %25, %cst_10 [1] : vector<8x128xf32> to vector<8xf32>
    %27 = vector.shape_cast %26 : vector<8xf32> to vector<8x1xf32>
    %28 = arith.addf %22, %27 : vector<8x1xf32>
    %c0_11 = arith.constant 0 : index
    %c0_12 = arith.constant 0 : index
    %29 = vector.load %arg6[%c0_11, %c0_12] : memref<8x1xf32, #tpu.memory_space<vmem>>, vector<8x1xf32>
    tpu.vector_store %arg6[%c0_11, %c0_12], %28 {strides = array<i32>} : memref<8x1xf32, #tpu.memory_space<vmem>>, vector<8x1xf32>,
    %c0_13 = arith.constant 0 : index
    %c0_14 = arith.constant 0 : index
    %30 = vector.load %arg7[%c0_13, %c0_14] : memref<8x1xf32, #tpu.memory_space<vmem>>, vector<8x1xf32>
    %31 = vector.broadcast %8 : vector<8x1xi32> to vector<8x128xi32>
    %32 = arith.cmpi eq, %5, %31 : vector<8x128xi32>
    %cst_15 = arith.constant 0.000000e+00 : f32
    %33 = vector.broadcast %cst_15 : f32 to vector<8x128xf32>
    %34 = arith.select %32, %14, %33 : vector<8x128xi1>, vector<8x128xf32>
    %cst_16 = arith.constant dense<0.000000e+00> : vector<8xf32>
    %35 = vector.multi_reduction <add>, %34, %cst_16 [1] : vector<8x128xf32> to vector<8xf32>
    %36 = vector.shape_cast %35 : vector<8xf32> to vector<8x1xf32>
    %37 = arith.addf %30, %36 : vector<8x1xf32>
    %c0_17 = arith.constant 0 : index
    %c0_18 = arith.constant 0 : index
    %38 = vector.load %arg7[%c0_17, %c0_18] : memref<8x1xf32, #tpu.memory_space<vmem>>, vector<8x1xf32>
    tpu.vector_store %arg7[%c0_17, %c0_18], %37 {strides = array<i32>} : memref<8x1xf32, #tpu.memory_space<vmem>>, vector<8x1xf32>,
    %c0_19 = arith.constant 0 : index
    %c0_20 = arith.constant 0 : index
    %39 = vector.load %arg5[%c0_19, %c0_20] : memref<8x1xf32, #tpu.memory_space<vmem>>, vector<8x1xf32>
    tpu.vector_store %arg5[%c0_19, %c0_20], %18 {strides = array<i32>} : memref<8x1xf32, #tpu.memory_space<vmem>>, vector<8x1xf32>,
    %c0_i32_21 = arith.constant 0 : i32
    %40 = arith.cmpi eq, %arg1, %c0_i32_21 : i32
    %41 = arith.extui %40 : i1 to i32
    %c0_i32_22 = arith.constant 0 : i32
    %42 = arith.cmpi ne, %41, %c0_i32_22 : i32
    scf.if %42 {
      %c0_23 = arith.constant 0 : index
      %c0_24 = arith.constant 0 : index
      %43 = vector.load %arg5[%c0_23, %c0_24] : memref<8x1xf32, #tpu.memory_space<vmem>>, vector<8x1xf32>
      %c0_25 = arith.constant 0 : index
      %c0_26 = arith.constant 0 : index
      %44 = vector.load %arg6[%c0_25, %c0_26] : memref<8x1xf32, #tpu.memory_space<vmem>>, vector<8x1xf32>
      %45 = math.log %44 : vector<8x1xf32>
      %46 = arith.addf %43, %45 : vector<8x1xf32>
      %c0_27 = arith.constant 0 : index
      %c0_28 = arith.constant 0 : index
      %47 = vector.load %arg7[%c0_27, %c0_28] : memref<8x1xf32, #tpu.memory_space<vmem>>, vector<8x1xf32>
      %48 = arith.subf %46, %47 : vector<8x1xf32>
      %c31_i32 = arith.constant 31 : i32
      %49 = vector.broadcast %c31_i32 : i32 to vector<8x1xi32>
      %50 = arith.cmpi ne, %4, %49 : vector<8x1xi32>
      %cst_29 = arith.constant 0.000000e+00 : f32
      %51 = vector.broadcast %cst_29 : f32 to vector<8x1xf32>
      %52 = arith.select %50, %48, %51 : vector<8x1xi1>, vector<8x1xf32>
      %53 = vector.shape_cast %52 : vector<8x1xf32> to vector<1x8x1xf32>
      %cst_30 = arith.constant dense<0.000000e+00> : vector<1xf32>
      %54 = vector.multi_reduction <add>, %53, %cst_30 [1, 2] : vector<1x8x1xf32> to vector<1xf32>
      %55 = vector.shape_cast %54 : vector<1xf32> to vector<1x1x1xf32>
      %56 = vector.extract %55[0, 0, 0] : f32 from vector<1x1x1xf32>
      %57 = tpu.iota {dimensions = array<i32: 0>} : vector<8x128xi32>
      %58 = tpu.iota {dimensions = array<i32: 1>} : vector<8x128xi32>
      %c0_i32_31 = arith.constant 0 : i32
      %59 = vector.broadcast %c0_i32_31 : i32 to vector<8x128xi32>
      %60 = arith.cmpi eq, %57, %59 : vector<8x128xi32>
      %c0_i32_32 = arith.constant 0 : i32
      %61 = vector.broadcast %c0_i32_32 : i32 to vector<8x128xi32>
      %62 = arith.cmpi eq, %58, %61 : vector<8x128xi32>
      %63 = arith.andi %60, %62 : vector<8x128xi1>
      %cst_33 = arith.constant 0.000000e+00 : f32
      %64 = vector.broadcast %56 : f32 to vector<8x128xf32>
      %65 = vector.broadcast %cst_33 : f32 to vector<8x128xf32>
      %66 = arith.select %63, %64, %65 : vector<8x128xi1>, vector<8x128xf32>
      %c0_34 = arith.constant 0 : index
      %c0_35 = arith.constant 0 : index
      %67 = vector.load %arg4[%c0_34, %c0_35] : memref<8x128xf32, #tpu.memory_space<vmem>>, vector<8x128xf32>
      tpu.vector_store %arg4[%c0_34, %c0_35], %66 {strides = array<i32>} : memref<8x128xf32, #tpu.memory_space<vmem>>, vector<8x128xf32>,
    } else {
    }
    return
  }
  func.func @transform_0(%arg0: i32, %arg1: i32) -> (i32, i32) {
    %c0_i32 = arith.constant 0 : i32
    return %arg0, %arg1 : i32, i32
  }
  func.func @transform_1(%arg0: i32, %arg1: i32) -> (i32, i32) {
    %c0_i32 = arith.constant 0 : i32
    %c0_i32_0 = arith.constant 0 : i32
    return %arg0, %c0_i32 : i32, i32
  }
  func.func @transform_2(%arg0: i32, %arg1: i32) -> (i32, i32) {
    %c0_i32 = arith.constant 0 : i32
    %c0_i32_0 = arith.constant 0 : i32
    return %arg0, %c0_i32 : i32, i32
  }
}

</mosaic_0001>

<bundles_post_ra>
// kernel: tpu_custom_call.1
= control target key start
LH: loop header
LB: loop body
LE: loop exit
PB: predicated region body
PF: predicated region fallthrough
CT: control target
= control target key end

     0   :  { %7 = vsyncpa [#allocation6], 0  ;;  %s651_s0 = inlined_call_operand.vmem [shape: f32[16,32], index: 0, kind: input, shape index: {}]   ;;  %s652_s1 = inlined_call_operand.vmem [shape: s32[16,1], index: 1, kind: input, shape index: {}]   ;;  %s653_s2 = inlined_call_operand.hbm [shape: f32[16,128], index: 2, kind: output, shape index: {}]  }
   0x1   :  { %9 = vsyncpa [#allocation6 + $0x1], 0  ;;  %s537_s9 = smov 0   ;;  %s539_s10 = smov 0  }
   0x2   :  { %s541_s11 = smov 0   ;;  %s543_s12 = smov 0  }
   0x3   :  { %s545_s13 = smov 0   ;;  %s547_s14 = smov 0  }
   0x4 LB: > { %s359_s15 = sadd.s32 4294967295, %s517_s14   ;;  %s360_s16 = sadd.s32 4294967294, %s517_s14   ;;  %s517_s14 = sphi %s547_s14, %s15_s14   ;;  %s513_s13 = sphi %s545_s13, %s660_s13   ;;  %s509_s12 = sphi %s543_s12, %s659_s12   ;;  %s505_s11 = sphi %s541_s11, %s658_s11   ;;  %s501_s10 = sphi %s539_s10, %s657_s10   ;;  %s497_s9 = sphi %s537_s9, %s656_s9  }
   0x5   : > { %s27_s17 = sadd.s32 1, %s513_s13  ;;  %s88_s18 = sadd.s32 1, %s505_s11 }
   0x6   : > { %p29_p0 = scmp.ge.s32.totalorder %s27_s17, 2  ;;  %p98_p1 = scmp.ne.s32.totalorder %s505_s11, %s501_s10 }
   0x7   : > { %p99_p2 = scmp.eq.s32.totalorder %s359_s15, 1  ;;  %p104_p3 = scmp.ne.s32.totalorder %s501_s10, %s497_s9 }
   0x8   : > { %s662_s17 = smov (%p29_p0, %s27_s17), 0  ;;  %p105_p5 = scmp.eq.s32.totalorder %s360_s16, 1 }
   0x9   : > { %p577_p4 = por %p99_p2, %p98_p1  ;;  %s85_s20 = ssub.s32 %s513_s13, %s662_s17 }
   0xa   : > { %p363_p6 = scmp.ge.s32.totalorder %s517_s14, 1  ;;  %p86_p7 = scmp.eq.s32.totalorder %s85_s20, 0 }
   0xb   : > { %p584_p8 = por %p105_p5, %p104_p3  ;;  %p140_p9 = scmp.lt.s32.totalorder %s517_s14, 3 }
   0xc   : > { %s590_s22 = scalar_select %p86_p7, %s505_s11, %s88_s18  }
   0xd   : > { %p141_p10 = pnand %p363_p6, %p140_p9 }
   0xe   : > { %p168_p11 = scmp.lt.s32.totalorder (!%p141_p10), %s509_s12, 1  ;;  %s165_s3 = sand.u32 (!%p141_p10), 1, %s501_s10  }
   0xf   : > { %144 = sbr.rel (%p141_p10) target bundleno = 594 (0x252), region = 28  ;;  %s364_s4 = sshll.u32 (!%p141_p10), %s165_s3, 3 }
  0x10   : > { %s368_s5 = sshll.u32 (!%p141_p10), %s509_s12, 3  ;;  %s167_s15 = scalar_lea.vmem (!%p141_p10), [#allocation5], %s364_s4 }
  0x11   : > { %s272_s8 = scalar_lea.hbm (!%p141_p10), %s653_s2, %s368_s5  ;;  %s274_s16 = sshll.u32 (!%p141_p10), %s167_s15, 4  ;;  %s275_s16 = int_to_ptr.vmem [resolvable:$true] %s274_s16 }
  0x12   : > { %s276_s18 = sshll.u32 (!%p141_p10), %s272_s8, 4  ;;  %s277_s18 = int_to_ptr.hbm [resolvable:$true] %s276_s18 }
  0x14   : > { %v189_v0 = vlaneseq  ;;  %vm183_vm0 = vcmask 7168   ;;  %v519_v1 = vmov -1e+30   ;;  %s169_s23 = scalar_select %p168_p11, %s509_s12, 1  ;;  %v520_v5 = vmov 0  }
  0x15   : > { %184 = vst.msk [vmem:[#allocation2] sm:$0xff] %vm183_vm0, %v519_v1  ;;  %431 = vset.pattern.permute.xlu0 %v520_v5  ;;  %432 = vset.pattern.permute.xlu1 %v520_v5  ;;  %v521_v6 = vmov 0.0   ;;  %s453_s12 = sshra.s32 %s277_s18, 4  ;;  %s454_s12 = int_to_ptr.hbm [resolvable:$true] %s453_s12 }
  0x16   : > { %v596_v2 = vand.u32 127, %v189_v0  ;;  %s365_s24 = sshll.u32 %s169_s23, 3  ;;  %185 = vst.msk [vmem:[#allocation3] sm:$0xff] %vm183_vm0, %v521_v6  ;;  %v254_v43 = vshrl.u32 %v189_v0, 7  ;;  %s262_s23 = scalar_lea.sflag [#allocation6], %s165_s3 }
  0x17   : > { %s174_s27 = scalar_lea.vmem %s651_s0, %s365_s24  ;;  %s178_s30 = scalar_lea.vmem %s652_s1, %s365_s24  ;;  %186 = vst.msk [vmem:[#allocation4] sm:$0xff] %vm183_vm0, %v521_v6 }
  0x18   : > { %vm196_vm1 = vcmp.lt.s32.totalorder %v596_v2, 32  ;;  %v187_v3 = vld [vmem:[%s174_s27] sm:$0xff]  ;;  %vm255_vm4 = vcmp.eq.s32.totalorder %v254_v43, 0  ;;  %vm256_vm5 = vcmp.eq.s32.totalorder %v596_v2, 0  ;;  %s455_s24 = scalar_lea.hbm %s454_s12, 8  ;;  %s459_s27 = scalar_lea.hbm %s653_s2, 16 }
  0x19   : > { %v197_v4 = vsel %vm196_vm1, %v187_v3, -1e+30  ;;  %v188_v7 = vld [vmem:[%s178_s30] sm:$0xff]  ;;  %vm257_vm6 = vmand %vm255_vm4, %vm256_vm5  ;;  %p456_p12 = scmp.ne.s32.totalorder %s454_s12, %s455_s24  ;;  %p460_p1 = scmp.lt.s32.totalorder %s454_s12, %s653_s2 }
  0x1a   : > { %199 = vmax.xlane.f32.xlu0 %v197_v4  ;;  %222 = vperm.xlu1 %432, %v188_v7   ;;  %vm241_vm3 = vcmp.ne.s32.totalorder %v188_v7, 31  ;;  %p461_p2 = scmp.lt.s32.totalorder %s459_s27, %s455_s24 }
  0x1b   : > { %p457_p13 = pnand %p456_p12, %p577_p4 }
  0x1c   : > { %v198_v8 = vld [vmem:[#allocation2] sm:$0xff]  ;;  %p462_p3 = por %p461_p2, %p460_p1 }
  0x1d   : > { %v205_v23 = vld [vmem:[#allocation3] sm:$0xff]  ;;  %p458_p0 = pneg %p457_p13 }
  0x1e   : > { %v220_v18 = vld [vmem:[#allocation4] sm:$0xff] }
  0x1f   : > { %p463_p5 = pnand %p462_p3, %p458_p0 }
  0x8c   : > { %v223_v12 = vpop.permute.xlu1 %222 }
  0x8d   : > { %v200_v9 = vpop.xlane.xlu0 %199  ;;  %vm224_vm2 = vcmp.eq.s32.totalorder %v596_v2, %v223_v12 }
  0x8e   : > { %v201_v10 = vmax.f32 %v198_v8, %v200_v9  ;;  %v225_v13 = vsel %vm224_vm2, %v197_v4, 0.0 }
  0x8f   : > { %226 = vadd.xlane.f32.xlu2 %v225_v13 }
  0x90   : > { %v202_v11 = vsub.f32 %v198_v8, %v201_v10  ;;  %230 = vst.msk [vmem:[#allocation2] sm:$0xff] %vm183_vm0, %v201_v10  ;;  %209 = vperm.xlu0 %431, %v201_v10  }
  0x92   : > { %v203_v21 = vmul.f32 1.442695, %v202_v11 }
  0x97   : > { %v234_v30 = vld [vmem:[#allocation2] sm:$0xff] }
 0x102   : > { %v210_v14 = vpop.permute.xlu0 %209  ;;  %v227_v19 = vpop.xlane.xlu2 %226 }
 0x103   : > { %v212_v15 = vsub.f32 %v197_v4, %v210_v14  ;;  %v228_v20 = vadd.f32 %v227_v19, %v220_v18 }
 0x105   : > { %v213_v16 = vmul.f32 1.442695, %v212_v15  ;;  %229 = vst.msk [vmem:[#allocation4] sm:$0xff] %vm183_vm0, %v228_v20 }
 0x107   : > { %433 = vpow2.f32 %v213_v16 }
 0x108   : > { %435 = vpow2.f32 %v203_v21 }
 0x10c   : > { %v239_v31 = vld [vmem:[#allocation4] sm:$0xff] }
 0x10d   : > { %v434_v17 = vpop.eup %433 }
 0x10e   : > { %215 = vadd.xlane.f32.xlu1 %v434_v17  ;;  %v436_v22 = vpop.eup %435 }
 0x10f   : > { %v206_v24 = vmul.f32 %v436_v22, %v205_v23 }
 0x181   : > { %v216_v25 = vpop.xlane.xlu1 %215 }
 0x182   : > { %v217_v26 = vadd.f32 %v216_v25, %v206_v24 }
 0x184   : > { %219 = vst.msk [vmem:[#allocation3] sm:$0xff] %vm183_vm0, %v217_v26 }
 0x18b   : > { %v235_v27 = vld [vmem:[#allocation3] sm:$0xff] }
 0x18c   : > { %437 = vlog2.f32 %v235_v27 }
 0x192   : > { %v438_v28 = vpop.eup %437 }
 0x193   : > { %v237_v29 = vmul.f32 0.6931472, %v438_v28 }
 0x195   : > { %v238_v32 = vadd.f32 %v237_v29, %v234_v30 }
 0x197   : > { %v240_v33 = vsub.f32 %v238_v32, %v239_v31 }
 0x199   : > { %v242_v34 = vsel %vm241_vm3, %v240_v33, 0.0 }
 0x19a   : > { %v243_v35 = vsel %vm183_vm0, %v242_v34, 0.0 }
 0x19b   : > { %244 = vadd.xlane.f32.xlu2 %v243_v35 }
 0x20e   : > { %v245_v36 = vpop.xlane.xlu2 %244 }
 0x20f   : > { %v246_v37 = vrot.slane %v245_v36, 4 }
 0x211   : > { %v247_v38 = vadd.f32 %v246_v37, %v245_v36 }
 0x213   : > { %v248_v39 = vrot.slane %v247_v38, 2 }
 0x215   : > { %v249_v40 = vadd.f32 %v248_v39, %v247_v38 }
 0x217   : > { %v250_v41 = vrot.slane %v249_v40, 1 }
 0x219   : > { %v251_v42 = vadd.f32 %v250_v41, %v249_v40 }
 0x21b   : > { %371 = vpush %v251_v42 }
 0x24c   : > { %s372_s20 = spop %371 }
 0x24d   : > { %v258_v44 = vstv %s372_s20 }
 0x24e   : > { %v259_v45 = vsel %vm257_vm6, %v258_v44, 0.0 }
 0x24f   : > { %260 = vst [vmem:[%s167_s15] sm:$0xff] %v259_v45 }
 0x250   : > { %466 = shalt.err (!%p463_p5)
}
 0x251   : > { %373 = dma.vmem_to_hbm [thread:$0]  (%p577_p4), %s275_s16, 128, %s277_s18, %s262_s23  }
 0x252 PF: > { %p379_p6 = scmp.ge.s32.totalorder %s517_s14, 2  ;;  %s288_s30 = sand.u32 1, %s497_s9  }
 0x253   : > { %s289_s3 = scalar_lea.sflag [#allocation6], %s288_s30 }
 0x254   : > { %p376_p7 = pnand %p379_p6, %p584_p8 }
 0x256   : > { %p377_p9 = pneg %p376_p7 }
 0x258   : > { %492 = dma.done.wait (%p377_p9), %s289_s3, 128  }
 0x259   : > { %494 = vsyncadd (%p377_p9), %s289_s3, 4294967168  ;;  %s15_s14 = sadd.s32 1, %s517_s14   ;;  %s656_s9 = smov %s501_s10 }
 0x25a   : > { %p12_p10 = scmp.ge.s32.totalorder %s15_s14, 4   ;;  %s657_s10 = smov %s505_s11 }
 0x25b   : > { %s658_s11 = smov %s590_s22  ;;  %s659_s12 = smov %s513_s13 }
 0x25c   : > { %s660_s13 = smov %s662_s17  ;;  %14 = sbr.rel (!%p12_p10) target bundleno = 4 (0x4), region = 74 }
 0x261   :  { %295 = vsyncpa [#allocation6], 1 }
 0x262   :  { %297 = vsyncpa [#allocation6 + $0x1], 1 }

</bundles_post_ra>
